<compile_context>
chip_gen: v6e
topology: v6e:2x2x1
jax: 0.10.0
libtpu: 0.0.40
codegen_flags: <defaults>
</compile_context>

<pallas_src>
import functools

import jax
import jax.numpy as jnp
from jax import lax
from jax.experimental import pallas as pl
from jax.experimental.pallas import tpu as pltpu


def _softplus_beta(x, beta):
    # PyTorch F.softplus(x, beta): (1/beta) * log(1 + exp(beta*x)), switching to the
    # linear branch when beta*x > 20 (threshold).  log(1+e) instead of log1p: the
    # difference is far below f32 noise in the regime this model operates in.
    bx = x * beta
    safe = jnp.log(1.0 + jnp.exp(jnp.minimum(bx, 20.0))) / beta
    return jnp.where(bx > 20.0, x, safe)


def _vmem_capacity_bytes():
    # Per-TensorCore VMEM: 128 MiB on v5e/v6e, 64 MiB on v7x.  Conservative fallback.
    try:
        return int(pltpu.get_tpu_info().vmem_capacity_bytes)
    except Exception:
        return 64 << 20


def _vmem_limit(need_bytes):
    cap = _vmem_capacity_bytes()
    want = int(1.25 * need_bytes) + (2 << 20)
    return int(min(max(want, 32 << 20), cap - (4 << 20)))


def _pick_tk(N, itemsize, cap):
    """Contraction tile size: largest 128-multiple divisor whose double-buffered
    (tk, N) Jt tile fits a fraction of the per-generation VMEM budget."""
    tile_budget = cap // 3   # leave room for resident state blocks, outputs, scratch
    for cand in (512, 256, 128):
        if N % cand == 0 and 2 * cand * N * itemsize <= tile_budget:
            return cand
    if N % 128 == 0:
        return 128
    return N   # small / irregular N (e.g. the module default N=100): one full-width tile


# ----------------------------------------------------------------------------
# One-time weight preparation:  Jt = softplus(raw_J).T   (bf16 by default)
# ----------------------------------------------------------------------------
def _prep_kernel(rawj_ref, jt_ref):
    jt_ref[...] = _softplus_beta(rawj_ref[...], 1.0).T.astype(jt_ref.dtype)


def prepare_weights(raw_J, dtype=jnp.bfloat16, block=512):
    """Compute Jt = softplus(raw_J).T once, hoisted out of the per-step kernel.

    bf16 storage (default) halves the dominant HBM traffic of the step kernel and
    halves Jt's VMEM residency for the fused rollout; pass dtype=jnp.float32 if
    tighter fidelity than ~1e-3-scale state error is required.
    """
    N = raw_J.shape[0]
    blk = N
    for cand in (block, 256, 128):
        if cand <= N and N % cand == 0:
            blk = cand
            break
    nt = N // blk
    return pl.pallas_call(
        _prep_kernel,
        out_shape=jax.ShapeDtypeStruct((N, N), dtype),
        grid=(nt, nt),
        # output block (i, j) of Jt comes from input block (j, i) of raw_J, transposed.
        in_specs=[pl.BlockSpec((blk, blk), lambda i, j: (j, i))],
        out_specs=pl.BlockSpec((blk, blk), lambda i, j: (i, j)),
        compiler_params=pltpu.CompilerParams(
            dimension_semantics=("parallel", "parallel")),
    )(raw_J)


# ----------------------------------------------------------------------------
# Shared Euler-update epilogue (runs on the last contraction tile of a step).
# Branch-free global NaN fallback:
#   scale = dt if no NaN anywhere in (dh, du, dx, dh_I) else 0, and NaNs are masked
#   to 0 before the scaled add, so a bad step returns the old state exactly.
# ----------------------------------------------------------------------------
def _euler_update(h, u, x, h_I, R, syn, I_e, *, dt, U, tau, tau_f, tau_d,
                  alpha, I_b, J_EI, J_IE):
    inv_alpha = 1.0 / alpha
    uxR = u * x * R
    R_I = _softplus_beta(h_I, inv_alpha)

    dh = (-h + syn - J_EI * R_I + I_b + I_e) / tau
    du = (U - u) / tau_f + U * (1.0 - u) * R
    dx = (1.0 - x) / tau_d - uxR
    dh_I = (-h_I + J_IE * jnp.sum(R, axis=1, keepdims=True)) / tau

    nan_big = (jnp.isnan(dh) | jnp.isnan(du) | jnp.isnan(dx)).astype(jnp.float32)
    nan_small = jnp.isnan(dh_I).astype(jnp.float32)
    bad = jnp.maximum(jnp.max(nan_big), jnp.max(nan_small))   # 0.0 or 1.0 (global)
    scale = (1.0 - bad) * dt

    dh_c = jnp.where(jnp.isnan(dh), 0.0, dh)
    du_c = jnp.where(jnp.isnan(du), 0.0, du)
    dx_c = jnp.where(jnp.isnan(dx), 0.0, dx)
    dhI_c = jnp.where(jnp.isnan(dh_I), 0.0, dh_I)

    h_n = h + dh_c * scale
    u_n = u + du_c * scale
    x_n = x + dx_c * scale
    hI_n = h_I + dhI_c * scale
    return h_n, u_n, x_n, hI_n


# ----------------------------------------------------------------------------
# Single Euler step (== STPModel.forward), K-tiled over the contraction axis.
# ----------------------------------------------------------------------------
def _stp_step_kernel(h_ref, u_ref, x_ref, hI_ref, Ie_ref, jt_ref,
                     h_out, u_out, x_out, hI_out, ux_out,
                     R_sc, syn_sc,
                     *, dt, U, tau, tau_f, tau_d, alpha, I_b, J_EI, J_IE, tk):
    k = pl.program_id(0)
    nk = pl.num_programs(0)
    inv_alpha = 1.0 / alpha

    @pl.when(k == 0)
    def _init():
        syn_sc[...] = jnp.zeros_like(syn_sc)

    # Per K-tile: firing rate for this tile (EUP work spread across grid steps so it
    # hides under the Jt DMA) and the (B, tk) MXU LHS.
    off = pl.multiple_of(k * tk, tk)
    R_t = _softplus_beta(h_ref[:, pl.ds(off, tk)], inv_alpha)
    R_sc[:, pl.ds(off, tk)] = R_t
    lhs = u_ref[:, pl.ds(off, tk)] * x_ref[:, pl.ds(off, tk)] * R_t
    # syn[b, i] += sum_j lhs[b, j] * Jt[j, i]   (MXU, f32 accumulate)
    syn_sc[...] += lax.dot_general(
        lhs.astype(jt_ref.dtype), jt_ref[...],
        dimension_numbers=(((1,), (0,)), ((), ())),
        preferred_element_type=jnp.float32)

    @pl.when(k == nk - 1)
    def _finalize():
        h = h_ref[...]
        u = u_ref[...]
        x = x_ref[...]
        h_I = hI_ref[...]
        h_n, u_n, x_n, hI_n = _euler_update(
            h, u, x, h_I, R_sc[...], syn_sc[...], Ie_ref[...],
            dt=dt, U=U, tau=tau, tau_f=tau_f, tau_d=tau_d,
            alpha=alpha, I_b=I_b, J_EI=J_EI, J_IE=J_IE)
        h_out[...] = h_n
        u_out[...] = u_n
        x_out[...] = x_n
        hI_out[...] = hI_n
        ux_out[...] = u_n * x_n    # == old u*x in the NaN-fallback case


_STATIC_STP_ARGS = ("dt", "U", "tau", "tau_f", "tau_d", "alpha", "I_b", "J_EI", "J_IE")


@functools.partial(jax.jit, static_argnames=_STATIC_STP_ARGS)
def stp_forward(state, I_e, Jt, *, dt=1e-4, U=0.3, tau=0.008, tau_f=1.5,
                tau_d=0.3, alpha=1.5, I_b=8.0, J_EI=1.1, J_IE=2.2):
    """One Euler update step. state = (h, u, x, h_I); Jt = softplus(raw_J).T (prepared)."""
    h, u, x, h_I = state
    B, N = h.shape
    assert Jt.shape == (N, N) and h_I.shape == (B, 1)

    cap = _vmem_capacity_bytes()
    jsz = jnp.dtype(Jt.dtype).itemsize
    tk = _pick_tk(N, jsz, cap)
    nk = N // tk

    kernel = functools.partial(
        _stp_step_kernel, dt=dt, U=U, tau=tau, tau_f=tau_f, tau_d=tau_d,
        alpha=alpha, I_b=I_b, J_EI=J_EI, J_IE=J_IE, tk=tk)

    need = (2 * tk * N * jsz               # double-buffered Jt tile stream
            + 2 * (4 * B * N + B) * 4      # resident input blocks (h, u, x, Ie, h_I)
            + 2 * (4 * B * N + B) * 4      # output blocks
            + 2 * B * N * 4)               # scratch: R, syn accumulator

    full = lambda k: (0, 0)
    outs = pl.pallas_call(
        kernel,
        out_shape=(
            jax.ShapeDtypeStruct((B, N), jnp.float32),   # h_new
            jax.ShapeDtypeStruct((B, N), jnp.float32),   # u_new
            jax.ShapeDtypeStruct((B, N), jnp.float32),   # x_new
            jax.ShapeDtypeStruct((B, 1), jnp.float32),   # h_I_new
            jax.ShapeDtypeStruct((B, N), jnp.float32),   # u_new * x_new
        ),
        grid=(nk,),
        in_specs=[
            pl.BlockSpec((B, N), full),               # h
            pl.BlockSpec((B, N), full),               # u
            pl.BlockSpec((B, N), full),               # x
            pl.BlockSpec((B, 1), full),               # h_I
            pl.BlockSpec((B, N), full),               # I_e
            pl.BlockSpec((tk, N), lambda k: (k, 0)),  # Jt streamed over K
        ],
        out_specs=(
            pl.BlockSpec((B, N), full),
            pl.BlockSpec((B, N), full),
            pl.BlockSpec((B, N), full),
            pl.BlockSpec((B, 1), full),
            pl.BlockSpec((B, N), full),
        ),
        scratch_shapes=[pltpu.VMEM((B, N), jnp.float32),    # R
                        pltpu.VMEM((B, N), jnp.float32)],   # syn accumulator
        compiler_params=pltpu.CompilerParams(
            dimension_semantics=("arbitrary",),
            vmem_limit_bytes=_vmem_limit(need)),
    )(h, u, x, h_I, I_e, Jt)

    h_new, u_new, x_new, hI_new, ux = outs
    return (h_new, u_new, x_new, hI_new), ux


# ----------------------------------------------------------------------------
# Fused multi-step rollout: T Euler steps in one pallas_call, grid=(T, nk).
# State lives in VMEM scratch; I_e streamed per step; Jt resident when it fits.
# ----------------------------------------------------------------------------
def _stp_rollout_kernel(h_ref, u_ref, x_ref, hI_ref, Ie_ref, jt_ref,
                        h_out, u_out, x_out, hI_out, ux_out,
                        h_sc, u_sc, x_sc, hI_sc, R_sc, syn_sc,
                        *, dt, U, tau, tau_f, tau_d, alpha, I_b, J_EI, J_IE, tk):
    t = pl.program_id(0)
    k = pl.program_id(1)
    nt = pl.num_programs(0)
    nk = pl.num_programs(1)
    inv_alpha = 1.0 / alpha

    @pl.when((t == 0) & (k == 0))
    def _load_state():
        h_sc[...] = h_ref[...]
        u_sc[...] = u_ref[...]
        x_sc[...] = x_ref[...]
        hI_sc[...] = hI_ref[...]

    @pl.when(k == 0)
    def _reset_acc():
        syn_sc[...] = jnp.zeros_like(syn_sc)

    off = pl.multiple_of(k * tk, tk)
    R_t = _softplus_beta(h_sc[:, pl.ds(off, tk)], inv_alpha)
    R_sc[:, pl.ds(off, tk)] = R_t
    lhs = u_sc[:, pl.ds(off, tk)] * x_sc[:, pl.ds(off, tk)] * R_t
    syn_sc[...] += lax.dot_general(
        lhs.astype(jt_ref.dtype), jt_ref[...],
        dimension_numbers=(((1,), (0,)), ((), ())),
        preferred_element_type=jnp.float32)

    @pl.when(k == nk - 1)
    def _step():
        h_n, u_n, x_n, hI_n = _euler_update(
            h_sc[...], u_sc[...], x_sc[...], hI_sc[...],
            R_sc[...], syn_sc[...], Ie_ref[0],
            dt=dt, U=U, tau=tau, tau_f=tau_f, tau_d=tau_d,
            alpha=alpha, I_b=I_b, J_EI=J_EI, J_IE=J_IE)
        h_sc[...] = h_n
        u_sc[...] = u_n
        x_sc[...] = x_n
        hI_sc[...] = hI_n

    @pl.when((t == nt - 1) & (k == nk - 1))
    def _writeback():
        h_out[...] = h_sc[...]
        u_out[...] = u_sc[...]
        x_out[...] = x_sc[...]
        hI_out[...] = hI_sc[...]
        ux_out[...] = u_sc[...] * x_sc[...]   # == u_x returned by the last forward()


@functools.partial(jax.jit, static_argnames=_STATIC_STP_ARGS)
def stp_rollout(state, I_e_seq, Jt, *, dt=1e-4, U=0.3, tau=0.008, tau_f=1.5,
                tau_d=0.3, alpha=1.5, I_b=8.0, J_EI=1.1, J_IE=2.2):
    """T fused Euler steps (I_e_seq: (T, B, N)) in a single pallas_call.

    Preferred over a Python loop of stp_forward for T > 1: per-step call overhead
    disappears and (when Jt fits VMEM) Jt HBM traffic drops from T*N^2 to N^2.
    """
    h, u, x, h_I = state
    T, B, N = I_e_seq.shape
    assert h.shape == (B, N) and Jt.shape == (N, N) and h_I.shape == (B, 1)

    cap = _vmem_capacity_bytes()
    jsz = jnp.dtype(Jt.dtype).itemsize

    io_scratch_bytes = (2 * B * N                       # streamed I_e block (2 bufs)
                        + 2 * (3 * B * N + B)           # resident state inputs
                        + 2 * (4 * B * N + B)           # outputs
                        + 5 * B * N + B) * 4            # VMEM scratch
    # Residency gate (re-derived per generation; critical for v7x's 64 MiB VMEM):
    if 2 * N * N * jsz + io_scratch_bytes <= int(0.8 * (cap - (4 << 20))):
        tk = N                         # Jt loaded once, resident across all T steps
    else:
        tk = _pick_tk(N, jsz, cap)     # stream Jt K-tiles (re-read each step)
    nk = N // tk

    kernel = functools.partial(
        _stp_rollout_kernel, dt=dt, U=U, tau=tau, tau_f=tau_f, tau_d=tau_d,
        alpha=alpha, I_b=I_b, J_EI=J_EI, J_IE=J_IE, tk=tk)

    need = 2 * tk * N * jsz + io_scratch_bytes

    full = lambda t, k: (0, 0)
    outs = pl.pallas_call(
        kernel,
        out_shape=(
            jax.ShapeDtypeStruct((B, N), jnp.float32),
            jax.ShapeDtypeStruct((B, N), jnp.float32),
            jax.ShapeDtypeStruct((B, N), jnp.float32),
            jax.ShapeDtypeStruct((B, 1), jnp.float32),
            jax.ShapeDtypeStruct((B, N), jnp.float32),
        ),
        grid=(T, nk),
        in_specs=[
            pl.BlockSpec((B, N), full),                         # h0
            pl.BlockSpec((B, N), full),                         # u0
            pl.BlockSpec((B, N), full),                         # x0
            pl.BlockSpec((B, 1), full),                         # h_I0
            pl.BlockSpec((1, B, N), lambda t, k: (t, 0, 0)),    # I_e streamed over T
            pl.BlockSpec((tk, N), lambda t, k: (k, 0)),         # Jt (resident if nk==1)
        ],
        out_specs=(
            pl.BlockSpec((B, N), full),
            pl.BlockSpec((B, N), full),
            pl.BlockSpec((B, N), full),
            pl.BlockSpec((B, 1), full),
            pl.BlockSpec((B, N), full),
        ),
        scratch_shapes=[
            pltpu.VMEM((B, N), jnp.float32),   # h
            pltpu.VMEM((B, N), jnp.float32),   # u
            pltpu.VMEM((B, N), jnp.float32),   # x
            pltpu.VMEM((B, 1), jnp.float32),   # h_I
            pltpu.VMEM((B, N), jnp.float32),   # R
            pltpu.VMEM((B, N), jnp.float32),   # syn accumulator
        ],
        compiler_params=pltpu.CompilerParams(
            dimension_semantics=("arbitrary", "arbitrary"),
            vmem_limit_bytes=_vmem_limit(need)),
    )(h, u, x, h_I, I_e_seq, Jt)

    h_new, u_new, x_new, hI_new, ux = outs
    return (h_new, u_new, x_new, hI_new), ux


# ----------------------------------------------------------------------------
if __name__ == "__main__":
    B, N, T = 8, 128, 4
    key = jax.random.PRNGKey(0)
    k_j, k_h, k_u, k_x, k_hi, k_ie = jax.random.split(key, 6)

    # Deterministic parameter init matching __init__: raw_J = randn(N, N) * 0.1
    raw_J = jax.random.normal(k_j, (N, N), dtype=jnp.float32) * 0.1
    h = jax.random.normal(k_h, (B, N), dtype=jnp.float32)
    u = jax.nn.sigmoid(jax.random.normal(k_u, (B, N), dtype=jnp.float32))   # efficacies
    x = jax.nn.sigmoid(jax.random.normal(k_x, (B, N), dtype=jnp.float32))   # resources
    h_I = jax.random.normal(k_hi, (B, 1), dtype=jnp.float32)
    I_e_seq = jax.random.normal(k_ie, (T, B, N), dtype=jnp.float32)

    state0 = (h, u, x, h_I)

    # One-time weight preparation (hoisted softplus + transpose, bf16 storage).
    Jt = prepare_weights(raw_J)

    # --- single step (== STPModel.forward) ---
    state1, ux1 = stp_forward(state0, I_e_seq[0], Jt)

    # Pure-JAX f32 reference of the PyTorch forward for the same step.
    def ref_step(state, I_e):
        hh, uu, xx, hhI = state
        R = _softplus_beta(hh, 1.0 / 1.5)
        R_I = _softplus_beta(hhI, 1.0 / 1.5)
        J_eff = _softplus_beta(raw_J, 1.0)
        syn = jnp.matmul(J_eff, (uu * xx * R).T,
                         precision=lax.Precision.HIGHEST).T
        dh = (-hh + syn - 1.1 * R_I + 8.0 + I_e) / 0.008
        du = (0.3 - uu) / 1.5 + 0.3 * (1.0 - uu) * R
        dx = (1.0 - xx) / 0.3 - uu * xx * R
        dh_I = (-hhI + 2.2 * jnp.sum(R, axis=1, keepdims=True)) / 0.008
        h_n = hh + dh * 1e-4
        u_n = uu + du * 1e-4
        x_n = xx + dx * 1e-4
        hI_n = hhI + dh_I * 1e-4
        return (h_n, u_n, x_n, hI_n), u_n * x_n

    state1_ref, ux1_ref = ref_step(state0, I_e_seq[0])

    # --- fused rollout (preferred path for T > 1) vs repeated single steps ---
    st = state0
    ux_seq = None
    for t in range(T):
        st, ux_seq = stp_forward(st, I_e_seq[t], Jt)
    st_roll, ux_roll = stp_rollout(state0, I_e_seq, Jt)

    jax.block_until_ready((state1, ux1, st, ux_seq, st_roll, ux_roll))

    def _maxdiff(a, b):
        return float(jnp.max(jnp.abs(a - b)))

    # bf16 Jt vs the f32 reference: syn error is damped by dt/tau, well under 2e-3 here.
    errs = [_maxdiff(a, b) for a, b in zip(list(state1) + [ux1],
                                           list(state1_ref) + [ux1_ref])]
    # rollout vs repeated single steps (identical numerics path): should match tightly.
    errs += [_maxdiff(a, b) for a, b in zip(list(st) + [ux_seq],
                                            list(st_roll) + [ux_roll])]
    assert max(errs) < 2e-3, f"numerical mismatch: {errs}"
    print("KERNEL_OK")
</pallas_src>

<mosaic_0001>
module attributes {stable_mosaic.version = 11 : i64} {
  func.func @_prep_kernel(%arg0: i32, %arg1: i32, %arg2: memref<128x128xf32, #tpu.memory_space<vmem>>, %arg3: memref<128x128xbf16, #tpu.memory_space<vmem>>) attributes {dimension_semantics = [#tpu.dimension_semantics<parallel>, #tpu.dimension_semantics<parallel>], iteration_bounds = array<i64: 1, 1>, scalar_prefetch = 0 : i64, scratch_operands = 0 : i64, tpu.core_type = #tpu.core_type<tc>, window_params = [{transform_indices = @transform_0, window_bounds = array<i64: 128, 128>}, {transform_indices = @transform_1, window_bounds = array<i64: 128, 128>}]} {
    %c0 = arith.constant 0 : index
    %c0_0 = arith.constant 0 : index
    %0 = vector.load %arg2[%c0, %c0_0] : memref<128x128xf32, #tpu.memory_space<vmem>>, vector<128x128xf32>
    %cst = arith.constant 1.000000e+00 : f32
    %1 = vector.broadcast %cst : f32 to vector<128x128xf32>
    %2 = arith.mulf %0, %1 : vector<128x128xf32>
    %cst_1 = arith.constant 2.000000e+01 : f32
    %3 = vector.broadcast %cst_1 : f32 to vector<128x128xf32>
    %4 = arith.minimumf %2, %3 : vector<128x128xf32>
    %5 = math.exp %4 : vector<128x128xf32>
    %cst_2 = arith.constant 1.000000e+00 : f32
    %6 = vector.broadcast %cst_2 : f32 to vector<128x128xf32>
    %7 = arith.addf %6, %5 : vector<128x128xf32>
    %8 = math.log %7 : vector<128x128xf32>
    %cst_3 = arith.constant 1.000000e+00 : f32
    %9 = vector.broadcast %cst_3 : f32 to vector<128x128xf32>
    %10 = arith.divf %8, %9 : vector<128x128xf32>
    %cst_4 = arith.constant 2.000000e+01 : f32
    %11 = vector.broadcast %cst_4 : f32 to vector<128x128xf32>
    %12 = arith.cmpf ogt, %2, %11 : vector<128x128xf32>
    %13 = arith.select %12, %0, %10 : vector<128x128xi1>, vector<128x128xf32>
    %14 = tpu.transpose %13, [1, 0] : vector<128x128xf32> -> vector<128x128xf32>
    %15 = arith.truncf %14 : vector<128x128xf32> to vector<128x128xbf16>
    %c0_5 = arith.constant 0 : index
    %c0_6 = arith.constant 0 : index
    %16 = vector.load %arg3[%c0_5, %c0_6] : memref<128x128xbf16, #tpu.memory_space<vmem>>, vector<128x128xbf16>
    tpu.vector_store %arg3[%c0_5, %c0_6], %15 {strides = array<i32>} : memref<128x128xbf16, #tpu.memory_space<vmem>>, vector<128x128xbf16>,
    return
  }
  func.func @transform_0(%arg0: i32, %arg1: i32) -> (i32, i32) {
    %c0_i32 = arith.constant 0 : i32
    return %arg1, %arg0 : i32, i32
  }
  func.func @transform_1(%arg0: i32, %arg1: i32) -> (i32, i32) {
    %c0_i32 = arith.constant 0 : i32
    return %arg0, %arg1 : i32, i32
  }
}

</mosaic_0001>

<bundles_post_ra>
// kernel: tpu_custom_call.1
= control target key start
LH: loop header
LB: loop body
LE: loop exit
PB: predicated region body
PF: predicated region fallthrough
CT: control target
= control target key end

     0   :  { %6 = vsyncpa [#allocation3], 0  ;;  %s591_s0 = inlined_call_operand.hbm [shape: f32[128,128], index: 0, kind: input, shape index: {}]   ;;  %s592_s1 = inlined_call_operand.hbm [shape: bf16[128,128], index: 1, kind: output, shape index: {}]  }
   0x1   :  { %7 = vsyncpa [#allocation4], 0  ;;  %s489_s6 = smov [#allocation2]  }
   0x2   :  { %s13_s7 = sshll.u32 %s489_s6, 4  ;;  %s14_s7 = int_to_ptr.vmem [resolvable:$true] %s13_s7 }
   0x3   :  { %s453_s8 = scalar_lea.vmem %s14_s7, 2048  ;;  %p458_p1 = scmp.lt.s32.totalorder %s14_s7, %s14_s7 }
   0x4   :  { %p454_p0 = scmp.ne.s32.totalorder %s14_s7, %s453_s8  ;;  %p459_p2 = scmp.lt.s32.totalorder %s453_s8, %s453_s8 }
   0x6   :  { %p460_p3 = por %p459_p2, %p458_p1 }
   0x8   :  { %p461_p4 = pnand %p460_p3, %p454_p0 }
   0xa   :  { %464 = shalt.err (!%p461_p4)
}
   0xb   :  { %s490_s9 = smov 128   ;;  %s491_s10 = smov 8  }
   0xc   :  { %19 = dma.hbm_to_vmem [thread:$0]  %s591_s0, 2048, %s14_s7, [#allocation3], %s490_s9, %s490_s9, %s491_s10  }
   0xd   :  { %485 = dma.done.wait [#allocation3], 2048  }
   0xe   :  { %486 = vsyncadd [#allocation3], 4294965248  ;;  %v508_v0 = vld [vmem:[#allocation2] sm:$0xff]  ;;  %v510_v1 = vld [vmem:[#allocation2 + $0x8] sm:$0xff]  ;;  %s492_s0 = smov [#allocation5]  }
   0xf   :  { %v512_v2 = vld [vmem:[#allocation2 + $0x10] sm:$0xff]  ;;  %v39_v3 = vmin.f32 %v508_v0, 20.0  ;;  %v40_v4 = vmin.f32 %v510_v1, 20.0  ;;  %v516_v5 = vld [vmem:[#allocation2 + $0x18] sm:$0xff]  ;;  %v518_v6 = vld [vmem:[#allocation2 + $0x20] sm:$0xff]  ;;  %vm135_vm0 = vcmp.gt.f32.partialorder %v508_v0, 20.0 }
  0x10   :  { %v41_v7 = vmin.f32 %v512_v2, 20.0  ;;  %v42_v8 = vmin.f32 %v516_v5, 20.0  ;;  %v43_v11 = vmin.f32 %v518_v6, 20.0  ;;  %v523_v14 = vld [vmem:[#allocation2 + $0x28] sm:$0xff]  ;;  %v526_v17 = vld [vmem:[#allocation2 + $0x30] sm:$0xff]  ;;  %v528_v18 = vld [vmem:[#allocation2 + $0x38] sm:$0xff] }
  0x11   :  { %v55_v9 = vmul.f32 1.442695, %v39_v3  ;;  %v57_v10 = vmul.f32 1.442695, %v40_v4  ;;  %v44_v16 = vmin.f32 %v523_v14, 20.0  ;;  %v45_v20 = vmin.f32 %v526_v17, 20.0 }
  0x12   :  { %v59_v12 = vmul.f32 1.442695, %v41_v7  ;;  %v61_v13 = vmul.f32 1.442695, %v42_v8  ;;  %v63_v15 = vmul.f32 1.442695, %v43_v11 }
  0x13   :  { %381 = vpow2.f32 %v55_v9  ;;  %v65_v19 = vmul.f32 1.442695, %v44_v16  ;;  %v46_v21 = vmin.f32 %v528_v18, 20.0  ;;  %v67_v22 = vmul.f32 1.442695, %v45_v20  ;;  %v532_v23 = vld [vmem:[#allocation2 + $0x40] sm:$0xff] }
  0x14   :  { %383 = vpow2.f32 %v57_v10  ;;  %v47_v26 = vmin.f32 %v532_v23, 20.0  ;;  %v535_v29 = vld [vmem:[#allocation2 + $0x48] sm:$0xff]  ;;  %v538_v37 = vld [vmem:[#allocation2 + $0x50] sm:$0xff]  ;;  %v541_v42 = vld [vmem:[#allocation2 + $0x58] sm:$0xff]  ;;  %vm136_vm1 = vcmp.gt.f32.partialorder %v510_v1, 20.0  ;;  %vm137_vm2 = vcmp.gt.f32.partialorder %v512_v2, 20.0 }
  0x15   :  { %385 = vpow2.f32 %v59_v12  ;;  %v69_v24 = vmul.f32 1.442695, %v46_v21  ;;  %v48_v35 = vmin.f32 %v535_v29, 20.0  ;;  %v49_v40 = vmin.f32 %v538_v37, 20.0  ;;  %v544_v47 = vld [vmem:[#allocation2 + $0x60] sm:$0xff]  ;;  %v548_v56 = vld [vmem:[#allocation2 + $0x68] sm:$0xff] }
  0x16   :  { %387 = vpow2.f32 %v61_v13  ;;  %v71_v34 = vmul.f32 1.442695, %v47_v26  ;;  %v50_v45 = vmin.f32 %v541_v42, 20.0  ;;  %v51_v52 = vmin.f32 %v544_v47, 20.0  ;;  %v554_v7 = vld [vmem:[#allocation2 + $0x70] sm:$0xff]  ;;  %s284_s13 = sshll.u32 %s492_s0, 4  ;;  %s285_s13 = int_to_ptr.vmem [resolvable:$true] %s284_s13 }
  0x17   :  { %389 = vpow2.f32 %v63_v15  ;;  %v73_v39 = vmul.f32 1.442695, %v48_v35  ;;  %v75_v44 = vmul.f32 1.442695, %v49_v40  ;;  %v52_v61 = vmin.f32 %v548_v56, 20.0  ;;  %s465_s14 = scalar_lea.vmem %s285_s13, 1024  ;;  %p470_p6 = scmp.lt.s32.totalorder %s285_s13, %s285_s13 }
  0x18   :  { %391 = vpow2.f32 %v65_v19  ;;  %v77_v51 = vmul.f32 1.442695, %v50_v45  ;;  %v79_v60 = vmul.f32 1.442695, %v51_v52  ;;  %vm138_vm3 = vcmp.gt.f32.partialorder %v516_v5, 20.0  ;;  %p466_p5 = scmp.ne.s32.totalorder %s285_s13, %s465_s14  ;;  %p471_p7 = scmp.lt.s32.totalorder %s465_s14, %s465_s14 }
  0x19   :  { %393 = vpow2.f32 %v67_v22  ;;  %v81_v9 = vmul.f32 1.442695, %v52_v61  ;;  %vm139_vm4 = vcmp.gt.f32.partialorder %v518_v6, 20.0  ;;  %vm140_vm5 = vcmp.gt.f32.partialorder %v523_v14, 20.0 }
  0x1a   :  { %395 = vpow2.f32 %v69_v24  ;;  %vm141_vm6 = vcmp.gt.f32.partialorder %v526_v17, 20.0  ;;  %vm142_vm7 = vcmp.gt.f32.partialorder %v528_v18, 20.0  ;;  %vm143_vm8 = vcmp.gt.f32.partialorder %v532_v23, 20.0  ;;  %p472_p8 = por %p471_p7, %p470_p6 }
  0x1b   :  { %vm144_vm9 = vcmp.gt.f32.partialorder %v535_v29, 20.0  ;;  %vm145_vm10 = vcmp.gt.f32.partialorder %v538_v37, 20.0  ;;  %vm146_vm11 = vcmp.gt.f32.partialorder %v541_v42, 20.0  ;;  %vm147_vm12 = vcmp.gt.f32.partialorder %v544_v47, 20.0 }
  0x1c   :  { %vm148_vm13 = vcmp.gt.f32.partialorder %v548_v56, 20.0  ;;  %vm149_vm14 = vcmp.gt.f32.partialorder %v554_v7, 20.0  ;;  %p473_p9 = pnand %p472_p8, %p466_p5 }
  0x20   :  { %v382_v25 = vpop.eup %381 }
  0x21   :  { %v384_v27 = vpop.eup %383  ;;  %v87_v28 = vadd.f32 1.0, %v382_v25 }
  0x22   :  { %v386_v30 = vpop.eup %385  ;;  %v88_v31 = vadd.f32 1.0, %v384_v27 }
  0x23   :  { %v388_v32 = vpop.eup %387  ;;  %397 = vlog2.f32 %v87_v28  ;;  %v89_v33 = vadd.f32 1.0, %v386_v30 }
  0x24   :  { %399 = vlog2.f32 %v88_v31  ;;  %v90_v36 = vadd.f32 1.0, %v388_v32  ;;  %v390_v38 = vpop.eup %389 }
  0x25   :  { %401 = vlog2.f32 %v89_v33  ;;  %v91_v41 = vadd.f32 1.0, %v390_v38  ;;  %v392_v43 = vpop.eup %391 }
  0x26   :  { %403 = vpow2.f32 %v71_v34  ;;  %v92_v46 = vadd.f32 1.0, %v392_v43  ;;  %v394_v48 = vpop.eup %393 }
  0x27   :  { %405 = vlog2.f32 %v90_v36  ;;  %v396_v49 = vpop.eup %395  ;;  %v93_v55 = vadd.f32 1.0, %v394_v48 }
  0x28   :  { %407 = vpow2.f32 %v73_v39  ;;  %v94_v4 = vadd.f32 1.0, %v396_v49 }
  0x29   :  { %409 = vlog2.f32 %v91_v41 }
  0x2a   :  { %411 = vpow2.f32 %v75_v44 }
  0x2b   :  { %413 = vlog2.f32 %v92_v46 }
  0x2c   :  { %415 = vpow2.f32 %v77_v51 }
  0x2d   :  { %417 = vlog2.f32 %v93_v55 }
  0x2e   :  { %419 = vpow2.f32 %v79_v60 }
  0x2f   :  { %421 = vlog2.f32 %v94_v4 }
  0x30   :  { %v398_v50 = vpop.eup %397  ;;  %423 = vpow2.f32 %v81_v9 }
  0x31   :  { %v400_v53 = vpop.eup %399  ;;  %v104_v54 = vmul.f32 0.6931472, %v398_v50 }
  0x32   :  { %v402_v57 = vpop.eup %401  ;;  %v106_v58 = vmul.f32 0.6931472, %v400_v53 }
  0x33   :  { %v151_v59 = vsel %vm135_vm0, %v508_v0, %v104_v54  ;;  %v404_v62 = vpop.eup %403  ;;  %v108_v3 = vmul.f32 0.6931472, %v402_v57  ;;  %v53_v0 = vmin.f32 %v554_v7, 20.0 }
  0x34   :  { %167 = vxpose.xlu0.b32.start [1/16] %v151_v59, 128  ;;  %v152_v63 = vsel %vm136_vm1, %v510_v1, %v106_v58  ;;  %v406_v8 = vpop.eup %405  ;;  %v95_v13 = vadd.f32 1.0, %v404_v62  ;;  %v559_v1 = vld [vmem:[#allocation2 + $0x78] sm:$0xff] }
  0x35   :  { %v408_v10 = vpop.eup %407  ;;  %v153_v11 = vsel %vm137_vm2, %v512_v2, %v108_v3  ;;  %v110_v12 = vmul.f32 0.6931472, %v406_v8  ;;  %v83_v16 = vmul.f32 1.442695, %v53_v0  ;;  %v54_v19 = vmin.f32 %v559_v1, 20.0 }
  0x36   :  { %v410_v15 = vpop.eup %409  ;;  %425 = vlog2.f32 %v95_v13  ;;  %v96_v24 = vadd.f32 1.0, %v408_v10  ;;  %vm150_vm15 = vcmp.gt.f32.partialorder %v559_v1, 20.0 }
  0x37   :  { %v412_v20 = vpop.eup %411  ;;  %v154_v21 = vsel %vm138_vm3, %v516_v5, %v110_v12  ;;  %v112_v22 = vmul.f32 0.6931472, %v410_v15  ;;  %427 = vpow2.f32 %v83_v16  ;;  %v85_v25 = vmul.f32 1.442695, %v54_v19 }
  0x38   :  { %168 = vxpose.xlu0.b32.cont [2/16] %v152_v63, 128  ;;  %v414_v2 = vpop.eup %413  ;;  %429 = vlog2.f32 %v96_v24  ;;  %v97_v30 = vadd.f32 1.0, %v412_v20 }
  0x39   :  { %v416_v26 = vpop.eup %415  ;;  %v155_v27 = vsel %vm139_vm4, %v518_v6, %v112_v22  ;;  %v114_v28 = vmul.f32 0.6931472, %v414_v2  ;;  %431 = vpow2.f32 %v85_v25 }
  0x3a   :  { %v418_v31 = vpop.eup %417  ;;  %433 = vlog2.f32 %v97_v30  ;;  %v98_v34 = vadd.f32 1.0, %v416_v26 }
  0x3b   :  { %v420_v5 = vpop.eup %419  ;;  %v156_v32 = vsel %vm140_vm5, %v523_v14, %v114_v28  ;;  %v116_v33 = vmul.f32 0.6931472, %v418_v31 }
  0x3c   :  { %169 = vxpose.xlu0.b32.cont [3/16] %v153_v11, 128  ;;  %v422_v35 = vpop.eup %421  ;;  %435 = vlog2.f32 %v98_v34  ;;  %v99_v39 = vadd.f32 1.0, %v420_v5 }
  0x3d   :  { %v424_v36 = vpop.eup %423  ;;  %v157_v6 = vsel %vm141_vm6, %v526_v17, %v116_v33  ;;  %v118_v38 = vmul.f32 0.6931472, %v422_v35 }
  0x3e   :  { %437 = vlog2.f32 %v99_v39  ;;  %v100_v44 = vadd.f32 1.0, %v424_v36 }
  0x3f   :  { %v158_v14 = vsel %vm142_vm7, %v528_v18, %v118_v38 }
  0x40   :  { %170 = vxpose.xlu0.b32.cont [4/16] %v154_v21, 128  ;;  %439 = vlog2.f32 %v100_v44 }
  0x43   :  { %v426_v40 = vpop.eup %425 }
  0x44   :  { %171 = vxpose.xlu0.b32.cont [5/16] %v155_v27, 128  ;;  %v428_v41 = vpop.eup %427  ;;  %v120_v43 = vmul.f32 0.6931472, %v426_v40 }
  0x45   :  { %v430_v45 = vpop.eup %429  ;;  %v101_v49 = vadd.f32 1.0, %v428_v41 }
  0x46   :  { %v432_v46 = vpop.eup %431  ;;  %v159_v17 = vsel %vm143_vm8, %v532_v23, %v120_v43  ;;  %v122_v48 = vmul.f32 0.6931472, %v430_v45 }
  0x47   :  { %v434_v50 = vpop.eup %433  ;;  %441 = vlog2.f32 %v101_v49  ;;  %v102_v52 = vadd.f32 1.0, %v432_v46 }
  0x48   :  { %172 = vxpose.xlu0.b32.cont [6/16] %v156_v32, 128  ;;  %v160_v51 = vsel %vm144_vm9, %v535_v29, %v122_v48  ;;  %v124_v18 = vmul.f32 0.6931472, %v434_v50 }
  0x49   :  { %v436_v53 = vpop.eup %435  ;;  %443 = vlog2.f32 %v102_v52 }
  0x4a   :  { %v161_v54 = vsel %vm145_vm10, %v538_v37, %v124_v18  ;;  %v126_v55 = vmul.f32 0.6931472, %v436_v53 }
  0x4b   :  { %v438_v23 = vpop.eup %437 }
  0x4c   :  { %173 = vxpose.xlu0.b32.cont [7/16] %v157_v6, 128  ;;  %v162_v57 = vsel %vm146_vm11, %v541_v42, %v126_v55  ;;  %v128_v58 = vmul.f32 0.6931472, %v438_v23 }
  0x4d   :  { %v440_v59 = vpop.eup %439 }
  0x4e   :  { %v163_v29 = vsel %vm147_vm12, %v544_v47, %v128_v58  ;;  %v130_v60 = vmul.f32 0.6931472, %v440_v59 }
  0x50   :  { %174 = vxpose.xlu0.b32.cont [8/16] %v158_v14, 128  ;;  %v164_v37 = vsel %vm148_vm13, %v548_v56, %v130_v60 }
  0x54   :  { %175 = vxpose.xlu0.b32.cont [9/16] %v159_v17, 128  ;;  %v442_v61 = vpop.eup %441 }
  0x55   :  { %v132_v62 = vmul.f32 0.6931472, %v442_v61 }
  0x56   :  { %v444_v63 = vpop.eup %443 }
  0x57   :  { %v165_v42 = vsel %vm149_vm14, %v554_v7, %v132_v62  ;;  %v134_v3 = vmul.f32 0.6931472, %v444_v63 }
  0x58   :  { %176 = vxpose.xlu0.b32.cont [10/16] %v160_v51, 128 }
  0x59   :  { %v166_v47 = vsel %vm150_vm15, %v559_v1, %v134_v3 }
  0x5c   :  { %177 = vxpose.xlu0.b32.cont [11/16] %v161_v54, 128 }
  0x60   :  { %178 = vxpose.xlu0.b32.cont [12/16] %v162_v57, 128 }
  0x64   :  { %179 = vxpose.xlu0.b32.cont [13/16] %v163_v29, 128 }
  0x68   :  { %180 = vxpose.xlu0.b32.cont [14/16] %v164_v37, 128 }
  0x6c   :  { %181 = vxpose.xlu0.b32.cont [15/16] %v165_v42, 128 }
  0x70   :  { %182 = vxpose.xlu0.b32.end [16/16] %v166_v47, 128 }
  0xb0   :  { %v183_v4 = vpop.trf.xlu0 }
  0xb4   :  { %v184_v8 = vpop.trf.xlu0 }
  0xb5   :  { %v331_v9 = vpack.c.bf16 %v184_v8, %v183_v4 }
  0xb7   :  { %332 = vst [vmem:[#allocation5] sm:$0xff] %v331_v9  }
  0xb8   :  { %v185_v0 = vpop.trf.xlu0 }
  0xbc   :  { %v186_v56 = vpop.trf.xlu0 }
  0xbd   :  { %v336_v10 = vpack.c.bf16 %v186_v56, %v185_v0 }
  0xbf   :  { %368 = vst [vmem:[#allocation5 + $0x8] sm:$0xff] %v336_v10  }
  0xc0   :  { %v187_v11 = vpop.trf.xlu0 }
  0xc4   :  { %v188_v12 = vpop.trf.xlu0 }
  0xc5   :  { %v341_v13 = vpack.c.bf16 %v188_v12, %v187_v11 }
  0xc7   :  { %369 = vst [vmem:[#allocation5 + $0x10] sm:$0xff] %v341_v13  }
  0xc8   :  { %v189_v7 = vpop.trf.xlu0 }
  0xcc   :  { %v190_v15 = vpop.trf.xlu0 }
  0xcd   :  { %v346_v16 = vpack.c.bf16 %v190_v15, %v189_v7 }
  0xcf   :  { %370 = vst [vmem:[#allocation5 + $0x18] sm:$0xff] %v346_v16  }
  0xd0   :  { %v191_v19 = vpop.trf.xlu0 }
  0xd4   :  { %v192_v20 = vpop.trf.xlu0 }
  0xd5   :  { %v351_v1 = vpack.c.bf16 %v192_v20, %v191_v19 }
  0xd7   :  { %371 = vst [vmem:[#allocation5 + $0x20] sm:$0xff] %v351_v1  }
  0xd8   :  { %v193_v21 = vpop.trf.xlu0 }
  0xdc   :  { %v194_v22 = vpop.trf.xlu0 }
  0xdd   :  { %v356_v24 = vpack.c.bf16 %v194_v22, %v193_v21 }
  0xdf   :  { %372 = vst [vmem:[#allocation5 + $0x28] sm:$0xff] %v356_v24  }
  0xe0   :  { %v195_v2 = vpop.trf.xlu0 }
  0xe4   :  { %v196_v25 = vpop.trf.xlu0 }
  0xe5   :  { %v361_v26 = vpack.c.bf16 %v196_v25, %v195_v2 }
  0xe7   :  { %373 = vst [vmem:[#allocation5 + $0x30] sm:$0xff] %v361_v26  }
  0xe8   :  { %v197_v27 = vpop.trf.xlu0 }
  0xec   :  { %v198_v28 = vpop.trf.xlu0 }
  0xed   :  { %v366_v30 = vpack.c.bf16 %v198_v28, %v197_v27 }
  0xef   :  { %374 = vst [vmem:[#allocation5 + $0x38] sm:$0xff] %v366_v30  }
  0xf0   :  { %476 = shalt.err (!%p473_p9)
}
  0xf1   :  { %s493_s15 = smov 64   ;;  %s494_s16 = smov 4  }
  0xf2   :  { %290 = dma.vmem_to_hbm [thread:$0]  %s285_s13, 1024, %s592_s1, [#allocation4], %s493_s15, %s493_s15, %s494_s16  }
  0xf3   :  { %487 = dma.done.wait [#allocation4], 1024  }
  0xf4   :  { %488 = vsyncadd [#allocation4], 4294966272 }
  0xf5   :  { %294 = vsyncpa [#allocation3], 1 }
  0xf6   :  { %295 = vsyncpa [#allocation4], 1 }

</bundles_post_ra>
